<compile_context>
chip_gen: v5e
topology: v5e:2x2
jax: 0.10.0
libtpu: 0.0.40
codegen_flags: <defaults>
</compile_context>

<pallas_src>
import functools

import jax
import jax.numpy as jnp
from jax.experimental import pallas as pl
from jax.experimental.pallas import tpu as pltpu

_LANE = 128


# -----------------------------------------------------------------------------
# Generation-aware VMEM helpers.
# -----------------------------------------------------------------------------
@functools.lru_cache(maxsize=None)
def _vmem_capacity_bytes():
    try:
        return int(pltpu.get_tpu_info().vmem_capacity_bytes)
    except Exception:
        return 64 << 20  # conservative default (v7x per-TensorCore VMEM)


def _vmem_limit(est_bytes, vmem_cap):
    cap = int(0.85 * vmem_cap)
    return int(min(cap, max(32 << 20, 2 * est_bytes)))


def _fits_fused(n, vmem_cap):
    # Resident bf16 A (pipeliner may still double-buffer it) + a few MiB of
    # activations/weights must fit:  ~N<=4200 on v5e/v6e (128 MiB),
    # ~N<=2900 on v7x (64 MiB).
    return 2 * (2 * n * n) + (4 << 20) <= int(0.55 * vmem_cap)


def _choose_row_tile(n, vmem_cap):
    """Row tile for the streamed fallback: 128-aligned (bf16 sublane packing /
    v5e MXU granule), double-buffered bf16 (TM, N) A panel within ~30% of VMEM."""
    budget = max(4 << 20, int(0.30 * vmem_cap))
    tm_cap = budget // (2 * 2 * n)              # 2 buffers * 2 bytes/elem
    tm = min(1024, tm_cap, max(n // 2, 128))
    tm = max(128, (tm // 128) * 128)
    return tm


# -----------------------------------------------------------------------------
# Pallas kernels.
# -----------------------------------------------------------------------------
def _fused_gnn_kernel(a_ref, x_ref, w1_ref, b1_ref, w2_ref, b2_ref,
                      w3_ref, b3_ref, wc1_ref, bc1_ref, wc2_ref, bc2_ref,
                      o_ref):
    """Whole model, A resident in VMEM, activations never leave VMEM."""
    f32, bf16 = jnp.float32, jnp.bfloat16
    a = a_ref[...]                                   # bf16 (N, N), loaded once

    def gcn(h_bf, w_ref, b_ref):
        # H @ W first (few output cols), then aggregate: relu(A @ (H W) + b).
        hw = jnp.dot(h_bf, w_ref[...], preferred_element_type=f32)
        z = jnp.dot(a, hw.astype(bf16), preferred_element_type=f32) + b_ref[...]
        return jnp.maximum(z, 0.0)

    h = gcn(x_ref[...], w1_ref, b1_ref)
    h = gcn(h.astype(bf16), w2_ref, b2_ref)
    h = gcn(h.astype(bf16), w3_ref, b3_ref)

    # Classifier head: Linear -> ReLU -> (Dropout: identity at inference) -> Linear.
    h = jnp.maximum(
        jnp.dot(h.astype(bf16), wc1_ref[...], preferred_element_type=f32)
        + bc1_ref[...], 0.0)
    # TODO(synk): dropout is a no-op here (inference mode); no mask emitted.
    logits = (jnp.dot(h.astype(bf16), wc2_ref[...], preferred_element_type=f32)
              + bc2_ref[...])
    o_ref[...] = jax.nn.sigmoid(logits)              # lane-dense (128-wide) store


def _agg_relu_kernel(a_ref, hw_ref, b_ref, o_ref):
    """Streamed fallback, one GCN layer: o_tile = relu(A_tile @ HW + b)."""
    z = jnp.dot(a_ref[...], hw_ref[...], preferred_element_type=jnp.float32)
    o_ref[...] = jnp.maximum(z + b_ref[...], 0.0).astype(o_ref.dtype)


def _agg_head_kernel(a_ref, hw_ref, b_ref, wc1_ref, bc1_ref, wc2_ref, bc2_ref,
                     o_ref):
    """Streamed fallback, last GCN layer fused with MLP head + sigmoid."""
    f32, bf16 = jnp.float32, jnp.bfloat16
    z = jnp.dot(a_ref[...], hw_ref[...], preferred_element_type=f32)
    h = jnp.maximum(z + b_ref[...], 0.0)
    h = jnp.maximum(
        jnp.dot(h.astype(bf16), wc1_ref[...], preferred_element_type=f32)
        + bc1_ref[...], 0.0)
    logits = (jnp.dot(h.astype(bf16), wc2_ref[...], preferred_element_type=f32)
              + bc2_ref[...])
    o_ref[...] = jax.nn.sigmoid(logits)


# -----------------------------------------------------------------------------
# pallas_call wrappers.
# -----------------------------------------------------------------------------
def _fused_gnn_call(a_bf, x_bf, w1, b1, w2, b2, w3, b3, wc1, bc1, wc2p, bc2p,
                    *, vmem_cap):
    n = a_bf.shape[0]
    f_in = x_bf.shape[1]
    hid = w1.shape[1]
    out_pad = wc2p.shape[1]
    args = (a_bf, x_bf, w1, b1, w2, b2, w3, b3, wc1, bc1, wc2p, bc2p)

    weight_bytes = sum(int(v.size) * v.dtype.itemsize for v in args[2:])
    est = (2 * 2 * n * n + 2 * n * f_in + 3 * 4 * n * hid + weight_bytes
           + 2 * 4 * n * out_pad + (2 << 20))
    flops = 2 * n * (f_in * hid + 3 * n * hid + 3 * hid * hid + hid * out_pad)
    bytes_accessed = 2 * n * n + 2 * n * f_in + weight_bytes + 4 * n * out_pad

    # TODO(synk): resident operands could use pipeline_mode=pl.Buffered(1) to
    # reclaim their second pipeline buffer; left at the default for portability.
    return pl.pallas_call(
        _fused_gnn_kernel,
        out_shape=jax.ShapeDtypeStruct((n, out_pad), jnp.float32),
        grid_spec=pltpu.PrefetchScalarGridSpec(
            num_scalar_prefetch=0,
            grid=(1,),
            in_specs=[pl.BlockSpec(v.shape, lambda i: (0, 0)) for v in args],
            out_specs=pl.BlockSpec((n, out_pad), lambda i: (0, 0)),
        ),
        compiler_params=pltpu.CompilerParams(
            dimension_semantics=("arbitrary",),
            vmem_limit_bytes=_vmem_limit(est, vmem_cap)),
        cost_estimate=pl.CostEstimate(flops=flops, transcendentals=n * out_pad,
                                      bytes_accessed=bytes_accessed),
    )(*args)


def _agg_relu_call(a_bf, hw_bf, b_f32, *, tm, vmem_cap):
    n = a_bf.shape[0]
    hid = hw_bf.shape[1]
    est = 2 * 2 * tm * n + 2 * n * hid + 4 * hid + 2 * 2 * tm * hid + (2 << 20)
    return pl.pallas_call(
        _agg_relu_kernel,
        out_shape=jax.ShapeDtypeStruct((n, hid), jnp.bfloat16),
        grid_spec=pltpu.PrefetchScalarGridSpec(
            num_scalar_prefetch=0,
            grid=(n // tm,),
            in_specs=[
                pl.BlockSpec((tm, n), lambda i: (i, 0)),     # streamed A panel
                pl.BlockSpec((n, hid), lambda i: (0, 0)),    # resident HW
                pl.BlockSpec((1, hid), lambda i: (0, 0)),    # resident bias
            ],
            out_specs=pl.BlockSpec((tm, hid), lambda i: (i, 0)),
        ),
        compiler_params=pltpu.CompilerParams(
            dimension_semantics=("parallel",),
            vmem_limit_bytes=_vmem_limit(est, vmem_cap)),
        cost_estimate=pl.CostEstimate(
            flops=2 * n * n * hid, transcendentals=0,
            bytes_accessed=2 * n * n + 4 * n * hid + 4 * hid),
    )(a_bf, hw_bf, b_f32)


def _agg_head_call(a_bf, hw_bf, b_f32, wc1, bc1, wc2p, bc2p, *, tm, vmem_cap):
    n = a_bf.shape[0]
    hid = hw_bf.shape[1]
    out_pad = wc2p.shape[1]
    weight_bytes = (2 * int(wc1.size + wc2p.size)
                    + 4 * int(b_f32.size + bc1.size + bc2p.size))
    est = (2 * 2 * tm * n + 2 * n * hid + weight_bytes
           + 2 * 4 * tm * out_pad + (2 << 20))
    flops = 2 * n * n * hid + 2 * n * hid * hid + 2 * n * hid * out_pad
    return pl.pallas_call(
        _agg_head_kernel,
        out_shape=jax.ShapeDtypeStruct((n, out_pad), jnp.float32),
        grid_spec=pltpu.PrefetchScalarGridSpec(
            num_scalar_prefetch=0,
            grid=(n // tm,),
            in_specs=[
                pl.BlockSpec((tm, n), lambda i: (i, 0)),        # streamed A panel
                pl.BlockSpec((n, hid), lambda i: (0, 0)),       # resident HW3
                pl.BlockSpec((1, hid), lambda i: (0, 0)),
                pl.BlockSpec((hid, hid), lambda i: (0, 0)),
                pl.BlockSpec((1, hid), lambda i: (0, 0)),
                pl.BlockSpec((hid, out_pad), lambda i: (0, 0)),
                pl.BlockSpec((1, out_pad), lambda i: (0, 0)),
            ],
            out_specs=pl.BlockSpec((tm, out_pad), lambda i: (i, 0)),
        ),
        compiler_params=pltpu.CompilerParams(
            dimension_semantics=("parallel",),
            vmem_limit_bytes=_vmem_limit(est, vmem_cap)),
        cost_estimate=pl.CostEstimate(
            flops=flops, transcendentals=n * out_pad,
            bytes_accessed=2 * n * n + 2 * n * hid + weight_bytes + 4 * n * out_pad),
    )(a_bf, hw_bf, b_f32, wc1, bc1, wc2p, bc2p)


def _streamed_forward(a_bf, x_bf, params, bf, wc2p, bc2p, *, vmem_cap):
    """Large-N fallback: A streamed in 128-aligned row tiles, HW hoisted."""
    n = a_bf.shape[0]
    tm = _choose_row_tile(n, vmem_cap)
    n_pad = ((n + tm - 1) // tm) * tm           # grid >= 2 steps (megacore on v7x)
    if n_pad != n:
        a_bf = jnp.pad(a_bf, ((0, n_pad - n), (0, n_pad - n)))
        x_bf = jnp.pad(x_bf, ((0, n_pad - n), (0, 0)))

    h = x_bf
    for w_key, b_key in (("w1", "b1"), ("w2", "b2")):
        # Hoisted per-layer feature transform (tiny matmul, done once).
        hw = jnp.dot(h, bf(w_key),
                     preferred_element_type=jnp.float32).astype(jnp.bfloat16)
        h = _agg_relu_call(a_bf, hw, params[b_key], tm=tm, vmem_cap=vmem_cap)

    hw = jnp.dot(h, bf("w3"),
                 preferred_element_type=jnp.float32).astype(jnp.bfloat16)
    out = _agg_head_call(a_bf, hw, params["b3"], bf("wc1"), params["bc1"],
                         wc2p, bc2p, tm=tm, vmem_cap=vmem_cap)
    return out[:n]


# -----------------------------------------------------------------------------
# Glue: PyG-style gcn_norm -> dense normalized adjacency (scatter, plain JAX).
# -----------------------------------------------------------------------------
def gcn_norm_dense(edge_index, edge_weight, num_nodes):
    src = edge_index[0]
    dst = edge_index[1]
    loop = jnp.arange(num_nodes, dtype=src.dtype)
    src = jnp.concatenate([src, loop])
    dst = jnp.concatenate([dst, loop])
    ew = jnp.concatenate(
        [edge_weight, jnp.ones((num_nodes,), dtype=edge_weight.dtype)])

    deg = jnp.zeros((num_nodes,), edge_weight.dtype).at[dst].add(ew)
    deg_inv_sqrt = jnp.where(deg > 0, jax.lax.rsqrt(deg), 0.0)
    norm = deg_inv_sqrt[src] * ew * deg_inv_sqrt[dst]

    # A[target, source] = norm  (duplicate edges accumulate, like scatter-add).
    a = jnp.zeros((num_nodes, num_nodes), edge_weight.dtype).at[dst, src].add(norm)
    return a


# -----------------------------------------------------------------------------
# Parameters (deterministic synthetic).
# -----------------------------------------------------------------------------
def init_params(key, in_channels, hidden_channels, out_channels, num_edge_types):
    ks = jax.random.split(key, 12)

    def dense(k, fan_in, fan_out):
        scale = 1.0 / jnp.sqrt(jnp.float32(fan_in))
        return jax.random.uniform(k, (fan_in, fan_out), jnp.float32, -scale, scale)

    return {
        # edge-type embedding, kept positive so deg^-1/2 stays real.
        "edge_emb": jax.random.uniform(ks[0], (num_edge_types, 1), jnp.float32,
                                       0.5, 1.5),
        "w1": dense(ks[1], in_channels, hidden_channels),
        "b1": jnp.zeros((1, hidden_channels), jnp.float32),
        "w2": dense(ks[2], hidden_channels, hidden_channels),
        "b2": jnp.zeros((1, hidden_channels), jnp.float32),
        "w3": dense(ks[3], hidden_channels, hidden_channels),
        "b3": jnp.zeros((1, hidden_channels), jnp.float32),
        "wc1": dense(ks[4], hidden_channels, hidden_channels),
        "bc1": jax.random.uniform(ks[5], (1, hidden_channels), jnp.float32,
                                  -0.1, 0.1),
        "wc2": dense(ks[6], hidden_channels, out_channels),
        "bc2": jax.random.uniform(ks[7], (1, out_channels), jnp.float32,
                                  -0.1, 0.1),
    }


@jax.jit
def cad_grouping_gnn_forward(params, x, edge_index, edge_attr, batch):
    del batch  # unused by the reference forward as well
    # edge_weight = Embedding(edge_attr).squeeze()
    edge_weight = params["edge_emb"][edge_attr, 0]            # [E]
    # TODO(synk): for production CAD graphs with E << N^2, replace the dense A
    # with a CSR + scalar-prefetch gather kernel; dense bf16 A kept here.
    a = gcn_norm_dense(edge_index, edge_weight, x.shape[0]).astype(jnp.bfloat16)

    n, _ = x.shape
    hid = params["w1"].shape[1]
    out_c = params["wc2"].shape[1]
    out_pad = max(_LANE, ((out_c + _LANE - 1) // _LANE) * _LANE)
    vmem_cap = _vmem_capacity_bytes()

    bf = lambda k: params[k].astype(jnp.bfloat16)
    # Pad classifier output dim to a full 128-lane vreg: unmasked final store;
    # padded columns are sliced off below.
    wc2p = jnp.zeros((hid, out_pad), jnp.bfloat16).at[:, :out_c].set(bf("wc2"))
    bc2p = jnp.zeros((1, out_pad), jnp.float32).at[:, :out_c].set(params["bc2"])

    if _fits_fused(n, vmem_cap):
        out = _fused_gnn_call(a, x.astype(jnp.bfloat16),
                              bf("w1"), params["b1"], bf("w2"), params["b2"],
                              bf("w3"), params["b3"],
                              bf("wc1"), params["bc1"], wc2p, bc2p,
                              vmem_cap=vmem_cap)
    else:
        out = _streamed_forward(a, x.astype(jnp.bfloat16), params, bf,
                                wc2p, bc2p, vmem_cap=vmem_cap)
    return out[:, :out_c]


# -----------------------------------------------------------------------------
# Pure-JAX f32 reference (same math, no Pallas) for a sanity check.
# -----------------------------------------------------------------------------
def reference_forward(params, x, edge_index, edge_attr, batch):
    del batch
    edge_weight = params["edge_emb"][edge_attr, 0]
    a = gcn_norm_dense(edge_index, edge_weight, x.shape[0])
    h = x
    for w, b in (("w1", "b1"), ("w2", "b2"), ("w3", "b3")):
        h = jnp.maximum(a @ (h @ params[w]) + params[b], 0.0)
    h = jnp.maximum(h @ params["wc1"] + params["bc1"], 0.0)
    logits = h @ params["wc2"] + params["bc2"]
    return jax.nn.sigmoid(logits)


if __name__ == "__main__":
    key = jax.random.PRNGKey(0)
    k_param, k_x, k_src, k_dst, k_attr = jax.random.split(key, 5)

    num_nodes = 16
    in_channels = 8
    hidden_channels = 32
    out_channels = 8
    num_edge_types = 3
    num_edges = 40

    params = init_params(k_param, in_channels, hidden_channels, out_channels,
                         num_edge_types)

    x = jax.random.normal(k_x, (num_nodes, in_channels), jnp.float32)
    src = jax.random.randint(k_src, (num_edges,), 0, num_nodes, jnp.int32)
    dst = jax.random.randint(k_dst, (num_edges,), 0, num_nodes, jnp.int32)
    edge_index = jnp.stack([src, dst], axis=0)                # [2, E]
    edge_attr = jax.random.randint(k_attr, (num_edges,), 0, num_edge_types,
                                   jnp.int32)
    batch = jnp.zeros((num_nodes,), jnp.int32)                # single graph

    out = cad_grouping_gnn_forward(params, x, edge_index, edge_attr, batch)
    out = jax.block_until_ready(out)

    ref = reference_forward(params, x, edge_index, edge_attr, batch)
    assert out.shape == (num_nodes, out_channels)
    # bf16 MXU operands -> loosened tolerance vs the f32 reference.
    assert jnp.allclose(out, ref, atol=2e-2, rtol=2e-2)

    print("KERNEL_OK")
</pallas_src>

<mosaic_0001>
module attributes {stable_mosaic.version = 11 : i64} {
  func.func @_fused_gnn_kernel(%arg0: i32, %arg1: memref<16x16xbf16, #tpu.memory_space<vmem>>, %arg2: memref<16x8xbf16, #tpu.memory_space<vmem>>, %arg3: memref<8x32xbf16, #tpu.memory_space<vmem>>, %arg4: memref<1x32xf32, #tpu.memory_space<vmem>>, %arg5: memref<32x32xbf16, #tpu.memory_space<vmem>>, %arg6: memref<1x32xf32, #tpu.memory_space<vmem>>, %arg7: memref<32x32xbf16, #tpu.memory_space<vmem>>, %arg8: memref<1x32xf32, #tpu.memory_space<vmem>>, %arg9: memref<32x32xbf16, #tpu.memory_space<vmem>>, %arg10: memref<1x32xf32, #tpu.memory_space<vmem>>, %arg11: memref<32x128xbf16, #tpu.memory_space<vmem>>, %arg12: memref<1x128xf32, #tpu.memory_space<vmem>>, %arg13: memref<16x128xf32, #tpu.memory_space<vmem>>) attributes {dimension_semantics = [#tpu.dimension_semantics<arbitrary>], iteration_bounds = array<i64: 1>, scalar_prefetch = 0 : i64, scratch_operands = 0 : i64, tpu.core_type = #tpu.core_type<tc>, window_params = [{pipeline_mode = #tpu.pipeline_mode<synchronous>, transform_indices = @transform_0, window_bounds = array<i64: 16, 16>}, {pipeline_mode = #tpu.pipeline_mode<synchronous>, transform_indices = @transform_1, window_bounds = array<i64: 16, 8>}, {pipeline_mode = #tpu.pipeline_mode<synchronous>, transform_indices = @transform_2, window_bounds = array<i64: 8, 32>}, {pipeline_mode = #tpu.pipeline_mode<synchronous>, transform_indices = @transform_3, window_bounds = array<i64: 1, 32>}, {pipeline_mode = #tpu.pipeline_mode<synchronous>, transform_indices = @transform_4, window_bounds = array<i64: 32, 32>}, {pipeline_mode = #tpu.pipeline_mode<synchronous>, transform_indices = @transform_5, window_bounds = array<i64: 1, 32>}, {pipeline_mode = #tpu.pipeline_mode<synchronous>, transform_indices = @transform_6, window_bounds = array<i64: 32, 32>}, {pipeline_mode = #tpu.pipeline_mode<synchronous>, transform_indices = @transform_7, window_bounds = array<i64: 1, 32>}, {pipeline_mode = #tpu.pipeline_mode<synchronous>, transform_indices = @transform_8, window_bounds = array<i64: 32, 32>}, {pipeline_mode = #tpu.pipeline_mode<synchronous>, transform_indices = @transform_9, window_bounds = array<i64: 1, 32>}, {pipeline_mode = #tpu.pipeline_mode<synchronous>, transform_indices = @transform_10, window_bounds = array<i64: 32, 128>}, {pipeline_mode = #tpu.pipeline_mode<synchronous>, transform_indices = @transform_11, window_bounds = array<i64: 1, 128>}, {pipeline_mode = #tpu.pipeline_mode<synchronous>, transform_indices = @transform_12, window_bounds = array<i64: 16, 128>}]} {
    %c0 = arith.constant 0 : index
    %c0_0 = arith.constant 0 : index
    %0 = vector.load %arg1[%c0, %c0_0] : memref<16x16xbf16, #tpu.memory_space<vmem>>, vector<16x16xbf16>
    %c0_1 = arith.constant 0 : index
    %c0_2 = arith.constant 0 : index
    %1 = vector.load %arg2[%c0_1, %c0_2] : memref<16x8xbf16, #tpu.memory_space<vmem>>, vector<16x8xbf16>
    %c0_3 = arith.constant 0 : index
    %c0_4 = arith.constant 0 : index
    %2 = vector.load %arg3[%c0_3, %c0_4] : memref<8x32xbf16, #tpu.memory_space<vmem>>, vector<8x32xbf16>
    %cst = arith.constant dense<0.000000e+00> : vector<16x32xf32>
    %3 = tpu.matmul %1, %2, %cst {dimension_numbers = #tpu.dot_dimension_numbers<[1], [0], [0], [1], [0, 0, 1, 1], [], []>} : vector<16x8xbf16>, vector<8x32xbf16>, vector<16x32xf32> -> vector<16x32xf32>
    %4 = arith.truncf %3 : vector<16x32xf32> to vector<16x32xbf16>
    %cst_5 = arith.constant dense<0.000000e+00> : vector<16x32xf32>
    %5 = tpu.matmul %0, %4, %cst_5 {dimension_numbers = #tpu.dot_dimension_numbers<[1], [0], [0], [1], [0, 0, 1, 1], [], []>} : vector<16x16xbf16>, vector<16x32xbf16>, vector<16x32xf32> -> vector<16x32xf32>
    %c0_6 = arith.constant 0 : index
    %c0_7 = arith.constant 0 : index
    %6 = vector.load %arg4[%c0_6, %c0_7] : memref<1x32xf32, #tpu.memory_space<vmem>>, vector<1x32xf32>
    %7 = vector.broadcast %6 : vector<1x32xf32> to vector<16x32xf32>
    %8 = arith.addf %5, %7 : vector<16x32xf32>
    %cst_8 = arith.constant 0.000000e+00 : f32
    %9 = vector.broadcast %cst_8 : f32 to vector<16x32xf32>
    %10 = arith.maximumf %8, %9 : vector<16x32xf32>
    %11 = arith.truncf %10 : vector<16x32xf32> to vector<16x32xbf16>
    %c0_9 = arith.constant 0 : index
    %c0_10 = arith.constant 0 : index
    %12 = vector.load %arg5[%c0_9, %c0_10] : memref<32x32xbf16, #tpu.memory_space<vmem>>, vector<32x32xbf16>
    %cst_11 = arith.constant dense<0.000000e+00> : vector<16x32xf32>
    %13 = tpu.matmul %11, %12, %cst_11 {dimension_numbers = #tpu.dot_dimension_numbers<[1], [0], [0], [1], [0, 0, 1, 1], [], []>} : vector<16x32xbf16>, vector<32x32xbf16>, vector<16x32xf32> -> vector<16x32xf32>
    %14 = arith.truncf %13 : vector<16x32xf32> to vector<16x32xbf16>
    %cst_12 = arith.constant dense<0.000000e+00> : vector<16x32xf32>
    %15 = tpu.matmul %0, %14, %cst_12 {dimension_numbers = #tpu.dot_dimension_numbers<[1], [0], [0], [1], [0, 0, 1, 1], [], []>} : vector<16x16xbf16>, vector<16x32xbf16>, vector<16x32xf32> -> vector<16x32xf32>
    %c0_13 = arith.constant 0 : index
    %c0_14 = arith.constant 0 : index
    %16 = vector.load %arg6[%c0_13, %c0_14] : memref<1x32xf32, #tpu.memory_space<vmem>>, vector<1x32xf32>
    %17 = vector.broadcast %16 : vector<1x32xf32> to vector<16x32xf32>
    %18 = arith.addf %15, %17 : vector<16x32xf32>
    %cst_15 = arith.constant 0.000000e+00 : f32
    %19 = vector.broadcast %cst_15 : f32 to vector<16x32xf32>
    %20 = arith.maximumf %18, %19 : vector<16x32xf32>
    %21 = arith.truncf %20 : vector<16x32xf32> to vector<16x32xbf16>
    %c0_16 = arith.constant 0 : index
    %c0_17 = arith.constant 0 : index
    %22 = vector.load %arg7[%c0_16, %c0_17] : memref<32x32xbf16, #tpu.memory_space<vmem>>, vector<32x32xbf16>
    %cst_18 = arith.constant dense<0.000000e+00> : vector<16x32xf32>
    %23 = tpu.matmul %21, %22, %cst_18 {dimension_numbers = #tpu.dot_dimension_numbers<[1], [0], [0], [1], [0, 0, 1, 1], [], []>} : vector<16x32xbf16>, vector<32x32xbf16>, vector<16x32xf32> -> vector<16x32xf32>
    %24 = arith.truncf %23 : vector<16x32xf32> to vector<16x32xbf16>
    %cst_19 = arith.constant dense<0.000000e+00> : vector<16x32xf32>
    %25 = tpu.matmul %0, %24, %cst_19 {dimension_numbers = #tpu.dot_dimension_numbers<[1], [0], [0], [1], [0, 0, 1, 1], [], []>} : vector<16x16xbf16>, vector<16x32xbf16>, vector<16x32xf32> -> vector<16x32xf32>
    %c0_20 = arith.constant 0 : index
    %c0_21 = arith.constant 0 : index
    %26 = vector.load %arg8[%c0_20, %c0_21] : memref<1x32xf32, #tpu.memory_space<vmem>>, vector<1x32xf32>
    %27 = vector.broadcast %26 : vector<1x32xf32> to vector<16x32xf32>
    %28 = arith.addf %25, %27 : vector<16x32xf32>
    %cst_22 = arith.constant 0.000000e+00 : f32
    %29 = vector.broadcast %cst_22 : f32 to vector<16x32xf32>
    %30 = arith.maximumf %28, %29 : vector<16x32xf32>
    %31 = arith.truncf %30 : vector<16x32xf32> to vector<16x32xbf16>
    %c0_23 = arith.constant 0 : index
    %c0_24 = arith.constant 0 : index
    %32 = vector.load %arg9[%c0_23, %c0_24] : memref<32x32xbf16, #tpu.memory_space<vmem>>, vector<32x32xbf16>
    %cst_25 = arith.constant dense<0.000000e+00> : vector<16x32xf32>
    %33 = tpu.matmul %31, %32, %cst_25 {dimension_numbers = #tpu.dot_dimension_numbers<[1], [0], [0], [1], [0, 0, 1, 1], [], []>} : vector<16x32xbf16>, vector<32x32xbf16>, vector<16x32xf32> -> vector<16x32xf32>
    %c0_26 = arith.constant 0 : index
    %c0_27 = arith.constant 0 : index
    %34 = vector.load %arg10[%c0_26, %c0_27] : memref<1x32xf32, #tpu.memory_space<vmem>>, vector<1x32xf32>
    %35 = vector.broadcast %34 : vector<1x32xf32> to vector<16x32xf32>
    %36 = arith.addf %33, %35 : vector<16x32xf32>
    %cst_28 = arith.constant 0.000000e+00 : f32
    %37 = vector.broadcast %cst_28 : f32 to vector<16x32xf32>
    %38 = arith.maximumf %36, %37 : vector<16x32xf32>
    %39 = arith.truncf %38 : vector<16x32xf32> to vector<16x32xbf16>
    %c0_29 = arith.constant 0 : index
    %c0_30 = arith.constant 0 : index
    %40 = vector.load %arg11[%c0_29, %c0_30] : memref<32x128xbf16, #tpu.memory_space<vmem>>, vector<32x128xbf16>
    %cst_31 = arith.constant dense<0.000000e+00> : vector<16x128xf32>
    %41 = tpu.matmul %39, %40, %cst_31 {dimension_numbers = #tpu.dot_dimension_numbers<[1], [0], [0], [1], [0, 0, 1, 1], [], []>} : vector<16x32xbf16>, vector<32x128xbf16>, vector<16x128xf32> -> vector<16x128xf32>
    %c0_32 = arith.constant 0 : index
    %c0_33 = arith.constant 0 : index
    %42 = vector.load %arg12[%c0_32, %c0_33] : memref<1x128xf32, #tpu.memory_space<vmem>>, vector<1x128xf32>
    %43 = vector.broadcast %42 : vector<1x128xf32> to vector<16x128xf32>
    %44 = arith.addf %41, %43 : vector<16x128xf32>
    %45 = arith.negf %44 : vector<16x128xf32>
    %46 = math.exp %45 : vector<16x128xf32>
    %cst_34 = arith.constant 1.000000e+00 : f32
    %47 = vector.broadcast %cst_34 : f32 to vector<16x128xf32>
    %48 = arith.addf %47, %46 : vector<16x128xf32>
    %49 = arith.divf %47, %48 : vector<16x128xf32>
    %c0_35 = arith.constant 0 : index
    %c0_36 = arith.constant 0 : index
    %50 = vector.load %arg13[%c0_35, %c0_36] : memref<16x128xf32, #tpu.memory_space<vmem>>, vector<16x128xf32>
    tpu.vector_store %arg13[%c0_35, %c0_36], %49 {strides = array<i32>} : memref<16x128xf32, #tpu.memory_space<vmem>>, vector<16x128xf32>,
    return
  }
  func.func @transform_0(%arg0: i32) -> (i32, i32) {
    %c0_i32 = arith.constant 0 : i32
    %c0_i32_0 = arith.constant 0 : i32
    %c0_i32_1 = arith.constant 0 : i32
    return %c0_i32, %c0_i32_0 : i32, i32
  }
  func.func @transform_1(%arg0: i32) -> (i32, i32) {
    %c0_i32 = arith.constant 0 : i32
    %c0_i32_0 = arith.constant 0 : i32
    %c0_i32_1 = arith.constant 0 : i32
    return %c0_i32, %c0_i32_0 : i32, i32
  }
  func.func @transform_2(%arg0: i32) -> (i32, i32) {
    %c0_i32 = arith.constant 0 : i32
    %c0_i32_0 = arith.constant 0 : i32
    %c0_i32_1 = arith.constant 0 : i32
    return %c0_i32, %c0_i32_0 : i32, i32
  }
  func.func @transform_3(%arg0: i32) -> (i32, i32) {
    %c0_i32 = arith.constant 0 : i32
    %c0_i32_0 = arith.constant 0 : i32
    %c0_i32_1 = arith.constant 0 : i32
    return %c0_i32, %c0_i32_0 : i32, i32
  }
  func.func @transform_4(%arg0: i32) -> (i32, i32) {
    %c0_i32 = arith.constant 0 : i32
    %c0_i32_0 = arith.constant 0 : i32
    %c0_i32_1 = arith.constant 0 : i32
    return %c0_i32, %c0_i32_0 : i32, i32
  }
  func.func @transform_5(%arg0: i32) -> (i32, i32) {
    %c0_i32 = arith.constant 0 : i32
    %c0_i32_0 = arith.constant 0 : i32
    %c0_i32_1 = arith.constant 0 : i32
    return %c0_i32, %c0_i32_0 : i32, i32
  }
  func.func @transform_6(%arg0: i32) -> (i32, i32) {
    %c0_i32 = arith.constant 0 : i32
    %c0_i32_0 = arith.constant 0 : i32
    %c0_i32_1 = arith.constant 0 : i32
    return %c0_i32, %c0_i32_0 : i32, i32
  }
  func.func @transform_7(%arg0: i32) -> (i32, i32) {
    %c0_i32 = arith.constant 0 : i32
    %c0_i32_0 = arith.constant 0 : i32
    %c0_i32_1 = arith.constant 0 : i32
    return %c0_i32, %c0_i32_0 : i32, i32
  }
  func.func @transform_8(%arg0: i32) -> (i32, i32) {
    %c0_i32 = arith.constant 0 : i32
    %c0_i32_0 = arith.constant 0 : i32
    %c0_i32_1 = arith.constant 0 : i32
    return %c0_i32, %c0_i32_0 : i32, i32
  }
  func.func @transform_9(%arg0: i32) -> (i32, i32) {
    %c0_i32 = arith.constant 0 : i32
    %c0_i32_0 = arith.constant 0 : i32
    %c0_i32_1 = arith.constant 0 : i32
    return %c0_i32, %c0_i32_0 : i32, i32
  }
  func.func @transform_10(%arg0: i32) -> (i32, i32) {
    %c0_i32 = arith.constant 0 : i32
    %c0_i32_0 = arith.constant 0 : i32
    %c0_i32_1 = arith.constant 0 : i32
    return %c0_i32, %c0_i32_0 : i32, i32
  }
  func.func @transform_11(%arg0: i32) -> (i32, i32) {
    %c0_i32 = arith.constant 0 : i32
    %c0_i32_0 = arith.constant 0 : i32
    %c0_i32_1 = arith.constant 0 : i32
    return %c0_i32, %c0_i32_0 : i32, i32
  }
  func.func @transform_12(%arg0: i32) -> (i32, i32) {
    %c0_i32 = arith.constant 0 : i32
    %c0_i32_0 = arith.constant 0 : i32
    %c0_i32_1 = arith.constant 0 : i32
    return %c0_i32, %c0_i32_0 : i32, i32
  }
}

</mosaic_0001>

<bundles_post_ra>
// kernel: cad_grouping_gnn_forward.1
= control target key start
LH: loop header
LB: loop body
LE: loop exit
PB: predicated region body
PF: predicated region fallthrough
CT: control target
= control target key end

     0   :  { %vm56_vm0 = vcmask 1043456   ;;  %vm52_vm1 = vcmask 64512   ;;  %vm84_vm2 = vcmask 130048   ;;  %vm121_vm3 = vcmask 261120   ;;  %s536_s2 = inlined_call_operand.vmem [shape: bf16[8,32], index: 2, kind: input, shape index: {}]   ;;  %s537_s1 = inlined_call_operand.vmem [shape: bf16[16,8], index: 1, kind: input, shape index: {}]   ;;  %s538_s3 = inlined_call_operand.vmem [shape: f32[1,32], index: 3, kind: input, shape index: {}]   ;;  %s539_s0 = inlined_call_operand.vmem [shape: bf16[16,16], index: 0, kind: input, shape index: {}]   ;;  %s540_s4 = inlined_call_operand.vmem [shape: bf16[32,32], index: 4, kind: input, shape index: {}]   ;;  %s541_s5 = inlined_call_operand.vmem [shape: f32[1,32], index: 5, kind: input, shape index: {}]   ;;  %s542_s6 = inlined_call_operand.vmem [shape: bf16[32,32], index: 6, kind: input, shape index: {}]   ;;  %s543_s7 = inlined_call_operand.vmem [shape: f32[1,32], index: 7, kind: input, shape index: {}]   ;;  %s544_s9 = inlined_call_operand.vmem [shape: f32[1,32], index: 9, kind: input, shape index: {}]   ;;  %s545_s8 = inlined_call_operand.vmem [shape: bf16[32,32], index: 8, kind: input, shape index: {}]   ;;  %s546_s11 = inlined_call_operand.vmem [shape: f32[1,128], index: 11, kind: input, shape index: {}]   ;;  %s547_s10 = inlined_call_operand.vmem [shape: bf16[32,128], index: 10, kind: input, shape index: {}]   ;;  %s548_s12 = inlined_call_operand.vmem [shape: f32[16,128], index: 12, kind: output, shape index: {}]  }
   0x1   :  { %v46_v0 = vld [vmem:[%s536_s2] sm:$0xf]  ;;  %v390_v7 = vld [vmem:[%s540_s4 + $0x8] sm:$0xff] }
   0x2   :  { %v58_v1 = vsel %vm56_vm0, %v46_v0, 0  ;;  %v388_v2 = vld [vmem:[%s537_s1] sm:$0xff]  ;;  %131 = vmatpush.bf16.msra.mxu2 %v390_v7  ;;  %v392_v20 = vld [vmem:[%s542_s6 + $0x8] sm:$0xff] }
   0x3   :  { %67 = vmatpush.bf16.msra.mxu0 %v58_v1  ;;  %v387_v6 = vld [vmem:[%s539_s0] sm:$0xff]  ;;  %v394_v33 = vld [vmem:[%s545_s8 + $0x8] sm:$0xff] }
   0x4   :  { %v389_v8 = vld [vmem:[%s540_s4] sm:$0xff]  ;;  %v396_v43 = vld [vmem:[%s547_s10 + $0x8] sm:$0xff] }
   0x5   :  { %v397_v10 = vld [vmem:[%s538_s3] ss:$0 sm:$0xff] }
   0x6   :  { %341 = vmatmul.msk.bf16.vlgmr.msra.gmra.mxu0 %vm52_vm1, %v388_v2  ;;  %132 = vmatpush.bf16.msra.mxu2 %v389_v8  ;;  %v391_v21 = vld [vmem:[%s542_s6] sm:$0xff] }
   0x7   :  { %186 = vmatpush.bf16.msrb.mxu0 %v392_v20  ;;  %v398_v23 = vld [vmem:[%s541_s5] ss:$0 sm:$0xff] }
   0x8   :  { %v393_v34 = vld [vmem:[%s545_s8] sm:$0xff] }
   0x9   :  { %v399_v36 = vld [vmem:[%s543_s7] ss:$0 sm:$0xff] }
   0xa   :  { %285 = vmatpush.bf16.msrb.mxu2 %v396_v43  ;;  %v395_v44 = vld [vmem:[%s547_s10] sm:$0xff] }
   0xb   :  { %187 = vmatpush.bf16.msrb.mxu0 %v391_v21  ;;  %v400_v46 = vld [vmem:[%s544_s9] ss:$0 sm:$0xff] }
   0xc   :  { %v401_v53 = vld [vmem:[%s546_s11] ss:$0 sm:$0xff] }
   0xe   :  { %286 = vmatpush.bf16.msrb.mxu2 %v395_v44 }
  0x83   :  { %v69_v3 = vpop.f32.mrf.mxu0 }
  0x8b   :  { %v71_v4 = vpop.f32.mrf.mxu0 }
  0x8c   :  { %v74_v5 = vpack.c.bf16 %v71_v4, %v69_v3 }
  0x8e   :  { %95 = vmatpush.bf16.msra.mxu1 %v74_v5 }
  0x91   :  { %346 = vmatmul.msk.bf16.vlgmr.msra.gmra.mxu1 %vm84_vm2, %v387_v6 }
 0x10e   :  { %v97_v9 = vpop.f32.mrf.mxu1 }
 0x10f   :  { %v98_v11 = vadd.f32 %v397_v10, %v97_v9 }
 0x111   :  { %v102_v14 = vmax.f32 %v98_v11, 0.0 }
 0x116   :  { %v99_v12 = vpop.f32.mrf.mxu1 }
 0x117   :  { %v100_v13 = vadd.f32 %v397_v10, %v99_v12 }
 0x119   :  { %v103_v15 = vmax.f32 %v100_v13, 0.0 }
 0x11b   :  { %v104_v16 = vpack.c.bf16 %v103_v15, %v102_v14 }
 0x11d   :  { %355 = vmatmul.msk.bf16.vlgmr.msra.gmra.mxu2 %vm121_vm3, %v104_v16 }
 0x1a0   :  { %v134_v17 = vpop.f32.mrf.mxu2 }
 0x1a8   :  { %v136_v18 = vpop.f32.mrf.mxu2 }
 0x1a9   :  { %v139_v19 = vpack.c.bf16 %v136_v18, %v134_v17 }
 0x1ab   :  { %151 = vmatpush.bf16.msra.mxu3 %v139_v19 }
 0x1ae   :  { %356 = vmatmul.msk.bf16.vlgmr.msra.gmra.mxu3 %vm84_vm2, %v387_v6 }
 0x1af   :  { %245 = vmatpush.bf16.msrb.mxu3 %v394_v33 }
 0x1b3   :  { %246 = vmatpush.bf16.msrb.mxu3 %v393_v34 }
 0x231   :  { %v153_v22 = vpop.f32.mrf.mxu3 }
 0x232   :  { %v154_v24 = vadd.f32 %v398_v23, %v153_v22 }
 0x234   :  { %v158_v27 = vmax.f32 %v154_v24, 0.0 }
 0x239   :  { %v155_v25 = vpop.f32.mrf.mxu3 }
 0x23a   :  { %v156_v26 = vadd.f32 %v398_v23, %v155_v25 }
 0x23c   :  { %v159_v28 = vmax.f32 %v156_v26, 0.0 }
 0x23e   :  { %v160_v29 = vpack.c.bf16 %v159_v28, %v158_v27 }
 0x240   :  { %365 = vmatmul.msk.bf16.vlgmr.msrb.gmra.mxu0 %vm121_vm3, %v160_v29 }
 0x2bd   :  { %v189_v30 = vpop.f32.mrf.mxu0 }
 0x2c5   :  { %v191_v31 = vpop.f32.mrf.mxu0 }
 0x2c6   :  { %v194_v32 = vpack.c.bf16 %v191_v31, %v189_v30 }
 0x2c8   :  { %206 = vmatpush.bf16.msrb.mxu1 %v194_v32 }
 0x2cb   :  { %366 = vmatmul.msk.bf16.vlgmr.msrb.gmra.mxu1 %vm84_vm2, %v387_v6 }
 0x348   :  { %v208_v35 = vpop.f32.mrf.mxu1 }
 0x349   :  { %v209_v37 = vadd.f32 %v399_v36, %v208_v35 }
 0x34b   :  { %v213_v40 = vmax.f32 %v209_v37, 0.0 }
 0x350   :  { %v210_v38 = vpop.f32.mrf.mxu1 }
 0x351   :  { %v211_v39 = vadd.f32 %v399_v36, %v210_v38 }
 0x353   :  { %v214_v41 = vmax.f32 %v211_v39, 0.0 }
 0x355   :  { %v215_v42 = vpack.c.bf16 %v214_v41, %v213_v40 }
 0x357   :  { %375 = vmatmul.msk.bf16.vlgmr.msrb.gmra.mxu3 %vm121_vm3, %v215_v42 }
 0x3da   :  { %v248_v45 = vpop.f32.mrf.mxu3 }
 0x3db   :  { %v249_v47 = vadd.f32 %v400_v46, %v248_v45 }
 0x3dd   :  { %v253_v50 = vmax.f32 %v249_v47, 0.0 }
 0x3e2   :  { %v250_v48 = vpop.f32.mrf.mxu3 }
 0x3e3   :  { %v251_v49 = vadd.f32 %v400_v46, %v250_v48 }
 0x3e5   :  { %v254_v51 = vmax.f32 %v251_v49, 0.0 }
 0x3e7   :  { %v255_v52 = vpack.c.bf16 %v254_v51, %v253_v50 }
 0x3e9   :  { %384 = vmatmul.msk.bf16.vlgmr.msrb.gmra.mxu2 %vm121_vm3, %v255_v52 }
 0x46c   :  { %v288_v54 = vpop.f32.mrf.mxu2 }
 0x46d   :  { %v289_v55 = vadd.f32 %v401_v53, %v288_v54 }
 0x46f   :  { %v385_v56 = vmul.f32 -1.442695, %v289_v55 }
 0x471   :  { %402 = vpow2.f32 %v385_v56 }
 0x474   :  { %v290_v57 = vpop.f32.mrf.mxu2 }
 0x475   :  { %v291_v58 = vadd.f32 %v401_v53, %v290_v57 }
 0x477   :  { %v403_v59 = vpop.eup %402  ;;  %v386_v60 = vmul.f32 -1.442695, %v291_v58 }
 0x478   :  { %v299_v61 = vadd.f32 1.0, %v403_v59 }
 0x479   :  { %404 = vpow2.f32 %v386_v60 }
 0x47a   :  { %406 = vrcp.f32 %v299_v61  ;;  %v312_v3 = vand.u32 2147483648, %v299_v61  ;;  %v310_v5 = vand.u32 2147483647, %v299_v61  ;;  %vm306_vm5 = vweird.f32 %v299_v61 }
 0x47c   :  { %v313_v8 = vor.u32 1.1754944e-38, %v312_v3  ;;  %vm311_vm7 = vcmp.eq.f32.partialorder %v310_v5, 8.507059e+37 }
 0x47f   :  { %v405_v62 = vpop.eup %404 }
 0x480   :  { %v407_v63 = vpop.eup %406  ;;  %v300_v0 = vadd.f32 1.0, %v405_v62 }
 0x481   :  { %v302_v1 = vmul.f32 %v407_v63, %v299_v61  ;;  %vm307_vm4 = vweird.f32 %v407_v63 }
 0x482   :  { %408 = vrcp.f32 %v300_v0  ;;  %vm308_vm6 = vmor %vm306_vm5, %vm307_vm4  ;;  %v327_v13 = vand.u32 2147483648, %v300_v0  ;;  %v325_v15 = vand.u32 2147483647, %v300_v0  ;;  %vm321_vm9 = vweird.f32 %v300_v0 }
 0x483   :  { %v303_v2 = vsub.f32 1.0, %v302_v1 }
 0x484   :  { %v328_v17 = vor.u32 1.1754944e-38, %v327_v13  ;;  %vm326_vm11 = vcmp.eq.f32.partialorder %v325_v15, 8.507059e+37 }
 0x485   :  { %v304_v4 = vmul.f32 %v407_v63, %v303_v2 }
 0x487   :  { %v305_v6 = vadd.f32 %v407_v63, %v304_v4 }
 0x488   :  { %v409_v7 = vpop.eup %408 }
 0x489   :  { %v309_v9 = vsel %vm308_vm6, %v407_v63, %v305_v6  ;;  %v317_v10 = vmul.f32 %v409_v7, %v300_v0  ;;  %vm322_vm8 = vweird.f32 %v409_v7 }
 0x48a   :  { %v314_v11 = vsel %vm311_vm7, %v313_v8, %v309_v9  ;;  %vm323_vm10 = vmor %vm321_vm9, %vm322_vm8 }
 0x48b   :  { %331 = vst [vmem:[%s548_s12] sm:$0xff] %v314_v11  ;;  %v318_v12 = vsub.f32 1.0, %v317_v10 }
 0x48d   :  { %v319_v14 = vmul.f32 %v409_v7, %v318_v12 }
 0x48f   :  { %v320_v16 = vadd.f32 %v409_v7, %v319_v14 }
 0x491   :  { %v324_v18 = vsel %vm323_vm10, %v409_v7, %v320_v16 }
 0x492   :  { %v329_v19 = vsel %vm326_vm11, %v328_v17, %v324_v18 }
 0x493   :  { %332 = vst [vmem:[%s548_s12 + $0x8] sm:$0xff] %v329_v19 }

</bundles_post_ra>
